<compile_context>
chip_gen: v7x
topology: tpu7x:2x2x1
jax: 0.10.0
libtpu: 0.0.40
codegen_flags: <defaults>
</compile_context>

<pallas_src>
import jax
import jax.numpy as jnp
from jax import lax
from jax.experimental import pallas as pl
from jax.experimental.pallas import tpu as pltpu


def _round_up(x, m):
    return (x + m - 1) // m * m


def text_rnn_kernel(x_ref, h0_ref, wih_ref, whh_ref, brnn_ref, w_ref, b_ref,
                    y_ref, xw_ref):
    """One-shot Elman RNN + readout for one batch tile.

    x_ref   : (S, Bt, Cp)  time-major inputs            (mxu dtype)
    h0_ref  : (Bt, Hp)     initial hidden state         (f32)
    wih_ref : (Cp, Hp)     W_ih^T                       (mxu dtype)
    whh_ref : (Hp, Hp)     W_hh^T                       (mxu dtype)
    brnn_ref: (1, Hp)      b_ih + b_hh                  (f32)
    w_ref   : (Hp, Cp)     readout W                    (mxu dtype)
    b_ref   : (1, Cp)      readout b                    (f32)
    y_ref   : (Bt, Cp)     output logits                (f32)
    xw_ref  : (S, Bt, Hp)  VMEM scratch: input projection (f32)
    """
    S, Bt, Cp = x_ref.shape
    Hp = whh_ref.shape[0]
    cdt = whh_ref.dtype

    # (1) Input projection for ALL timesteps in one large MXU matmul.  It has
    #     no recurrent dependence, so it is off the serial critical path; the
    #     bias broadcast happens exactly once (not per step).
    x_all = x_ref[...].reshape(S * Bt, Cp)
    xw = jnp.dot(x_all, wih_ref[...], preferred_element_type=jnp.float32)
    xw_ref[...] = (xw + brnn_ref[...]).reshape(S, Bt, Hp)

    # (2) Serial recurrence, fully unrolled for LLO scheduling visibility.
    #     Per step: h = tanh(XW[t] + h @ W_hh^T)   (f32 state, f32 tanh).
    def step(t, h):
        pre = xw_ref[t] + jnp.dot(h.astype(cdt), whh_ref[...],
                                  preferred_element_type=jnp.float32)
        return jnp.tanh(pre)

    h_last = lax.fori_loop(0, S, step, h0_ref[...].astype(jnp.float32),
                           unroll=True)

    # (3) Readout: y = b + h_last @ W
    y_ref[...] = (
        jnp.dot(h_last.astype(w_ref.dtype), w_ref[...],
                preferred_element_type=jnp.float32)
        + b_ref[...]
    ).astype(y_ref.dtype)


def text_rnn_forward(hidden, X, params, *, mxu_dtype=jnp.bfloat16):
    """hidden: (1, B, H), X: (B, S, C)  ->  y: (B, C).

    Matches TextRNN.forward: X is made time-major, run through a single-layer
    tanh RNN, and the last hidden state goes through y = b + h @ W.
    """
    w_ih, w_hh, b_ih, b_hh, W, b = (
        params["w_ih"], params["w_hh"], params["b_ih"], params["b_hh"],
        params["W"], params["b"],
    )
    B, S, C = X.shape
    H = w_hh.shape[0]

    # Lane/sublane-dense padding: last dims -> x128, batch -> x8.
    Bp = _round_up(B, 8)
    Cp = _round_up(C, 128)
    Hp = _round_up(H, 128)
    B_TILE = min(Bp, 128)
    Bp = _round_up(Bp, B_TILE)

    # Time-major, zero-padded operands.  MXU operands in bf16, biases/state f32.
    x_tm = jnp.transpose(X, (1, 0, 2))                                  # (S,B,C)
    x_p = jnp.zeros((S, Bp, Cp), mxu_dtype).at[:, :B, :C].set(
        x_tm.astype(mxu_dtype))
    h0_p = jnp.zeros((Bp, Hp), jnp.float32).at[:B, :H].set(hidden[0])
    wih_p = jnp.zeros((Cp, Hp), mxu_dtype).at[:C, :H].set(
        w_ih.T.astype(mxu_dtype))
    whh_p = jnp.zeros((Hp, Hp), mxu_dtype).at[:H, :H].set(
        w_hh.T.astype(mxu_dtype))
    brnn_p = jnp.zeros((1, Hp), jnp.float32).at[0, :H].set(b_ih + b_hh)
    w_p = jnp.zeros((Hp, Cp), mxu_dtype).at[:H, :C].set(W.astype(mxu_dtype))
    b_p = jnp.zeros((1, Cp), jnp.float32).at[0, :C].set(b)

    grid = (Bp // B_TILE,)

    # NOTE(v7x VMEM budget): at large H, the constant-index weight specs below
    # should use pipeline_mode=pl.Buffered(1) (or a one-time DMA into scratch)
    # so W_hh is not double-buffered against the 64 MiB VMEM.
    grid_spec = pltpu.PrefetchScalarGridSpec(
        num_scalar_prefetch=0,
        grid=grid,
        in_specs=[
            pl.BlockSpec((S, B_TILE, Cp), lambda i: (0, i, 0)),   # X (resident)
            pl.BlockSpec((B_TILE, Hp), lambda i: (i, 0)),         # h0
            pl.BlockSpec((Cp, Hp), lambda i: (0, 0)),             # W_ih^T
            pl.BlockSpec((Hp, Hp), lambda i: (0, 0)),             # W_hh^T
            pl.BlockSpec((1, Hp), lambda i: (0, 0)),              # b_ih + b_hh
            pl.BlockSpec((Hp, Cp), lambda i: (0, 0)),             # readout W
            pl.BlockSpec((1, Cp), lambda i: (0, 0)),              # readout b
        ],
        out_specs=pl.BlockSpec((B_TILE, Cp), lambda i: (i, 0)),
        scratch_shapes=[pltpu.VMEM((S, B_TILE, Hp), jnp.float32)],
    )

    y_p = pl.pallas_call(
        text_rnn_kernel,
        out_shape=jax.ShapeDtypeStruct((Bp, Cp), jnp.float32),
        grid_spec=grid_spec,
        compiler_params=pltpu.CompilerParams(
            # batch tiles are independent -> shard across v7x's 2 TCs;
            # sequence is serial and lives entirely inside the kernel body.
            dimension_semantics=("parallel",),
            vmem_limit_bytes=32 * 1024 * 1024,
        ),
    )(x_p, h0_p, wih_p, whh_p, brnn_p, w_p, b_p)

    return y_p[:B, :C]


def text_rnn_reference(hidden, X, params, *, mxu_dtype=jnp.bfloat16):
    """Pure-JAX reference matching torch.nn.RNN semantics, with the same
    bf16-operand / f32-accumulate rounding as the kernel's MXU matmuls."""
    w_ih, w_hh, b_ih, b_hh, W, b = (
        params["w_ih"], params["w_hh"], params["b_ih"], params["b_hh"],
        params["W"], params["b"],
    )
    c = lambda a: a.astype(mxu_dtype)
    x_tm = jnp.transpose(X, (1, 0, 2))
    h = hidden[0]
    for t in range(x_tm.shape[0]):
        pre = (jnp.dot(c(x_tm[t]), c(w_ih.T), preferred_element_type=jnp.float32)
               + b_ih + b_hh
               + jnp.dot(c(h), c(w_hh.T), preferred_element_type=jnp.float32))
        h = jnp.tanh(pre)
    return b + jnp.dot(c(h), c(W), preferred_element_type=jnp.float32)


if __name__ == "__main__":
    # Small deterministic config (n_class = vocab size, n_hidden = RNN width).
    batch, seq_len, n_class, n_hidden = 2, 8, 16, 32

    key = jax.random.PRNGKey(0)
    keys = jax.random.split(key, 7)

    params = {
        # nn.RNN stores weight_ih_l0 as (H, C), weight_hh_l0 as (H, H).
        "w_ih": jax.random.normal(keys[0], (n_hidden, n_class), jnp.float32) * 0.1,
        "w_hh": jax.random.normal(keys[1], (n_hidden, n_hidden), jnp.float32) * 0.1,
        "b_ih": jax.random.normal(keys[2], (n_hidden,), jnp.float32) * 0.1,
        "b_hh": jax.random.normal(keys[3], (n_hidden,), jnp.float32) * 0.1,
        # readout: self.W (H, C), self.b (C,)
        "W": jax.random.normal(keys[4], (n_hidden, n_class), jnp.float32),
        "b": jax.random.normal(keys[5], (n_class,), jnp.float32),
    }

    X = jax.random.normal(keys[6], (batch, seq_len, n_class), jnp.float32)
    hidden = jnp.zeros((1, batch, n_hidden), jnp.float32)

    y = text_rnn_forward(hidden, X, params)
    y = jax.block_until_ready(y)

    y_ref = text_rnn_reference(hidden, X, params)
    assert y.shape == (batch, n_class)
    assert jnp.allclose(y, y_ref, atol=1e-4, rtol=1e-4), "mismatch vs reference"

    print("KERNEL_OK")
</pallas_src>

<mosaic_0001>
module attributes {stable_mosaic.version = 11 : i64} {
  func.func @text_rnn_kernel(%arg0: i32, %arg1: memref<8x8x128xbf16, #tpu.memory_space<vmem>>, %arg2: memref<8x128xf32, #tpu.memory_space<vmem>>, %arg3: memref<128x128xbf16, #tpu.memory_space<vmem>>, %arg4: memref<128x128xbf16, #tpu.memory_space<vmem>>, %arg5: memref<1x128xf32, #tpu.memory_space<vmem>>, %arg6: memref<128x128xbf16, #tpu.memory_space<vmem>>, %arg7: memref<1x128xf32, #tpu.memory_space<vmem>>, %arg8: memref<8x128xf32, #tpu.memory_space<vmem>>, %arg9: memref<8x8x128xf32, #tpu.memory_space<vmem>>) attributes {dimension_semantics = [#tpu.dimension_semantics<parallel>], iteration_bounds = array<i64: 1>, scalar_prefetch = 0 : i64, scratch_operands = 1 : i64, tpu.core_type = #tpu.core_type<tc>, window_params = [{transform_indices = @transform_0, window_bounds = array<i64: 8, 8, 128>}, {transform_indices = @transform_1, window_bounds = array<i64: 8, 128>}, {pipeline_mode = #tpu.pipeline_mode<synchronous>, transform_indices = @transform_2, window_bounds = array<i64: 128, 128>}, {pipeline_mode = #tpu.pipeline_mode<synchronous>, transform_indices = @transform_3, window_bounds = array<i64: 128, 128>}, {pipeline_mode = #tpu.pipeline_mode<synchronous>, transform_indices = @transform_4, window_bounds = array<i64: 1, 128>}, {pipeline_mode = #tpu.pipeline_mode<synchronous>, transform_indices = @transform_5, window_bounds = array<i64: 128, 128>}, {pipeline_mode = #tpu.pipeline_mode<synchronous>, transform_indices = @transform_6, window_bounds = array<i64: 1, 128>}, {transform_indices = @transform_7, window_bounds = array<i64: 8, 128>}]} {
    %c0 = arith.constant 0 : index
    %c0_0 = arith.constant 0 : index
    %c0_1 = arith.constant 0 : index
    %0 = vector.load %arg1[%c0, %c0_0, %c0_1] : memref<8x8x128xbf16, #tpu.memory_space<vmem>>, vector<8x8x128xbf16>
    %1 = vector.shape_cast %0 : vector<8x8x128xbf16> to vector<64x128xbf16>
    %c0_2 = arith.constant 0 : index
    %c0_3 = arith.constant 0 : index
    %2 = vector.load %arg3[%c0_2, %c0_3] : memref<128x128xbf16, #tpu.memory_space<vmem>>, vector<128x128xbf16>
    %cst = arith.constant dense<0.000000e+00> : vector<64x128xf32>
    %3 = tpu.matmul %1, %2, %cst {dimension_numbers = #tpu.dot_dimension_numbers<[1], [0], [0], [1], [0, 0, 1, 1], [], []>} : vector<64x128xbf16>, vector<128x128xbf16>, vector<64x128xf32> -> vector<64x128xf32>
    %c0_4 = arith.constant 0 : index
    %c0_5 = arith.constant 0 : index
    %4 = vector.load %arg5[%c0_4, %c0_5] : memref<1x128xf32, #tpu.memory_space<vmem>>, vector<1x128xf32>
    %5 = vector.broadcast %4 : vector<1x128xf32> to vector<64x128xf32>
    %6 = arith.addf %3, %5 : vector<64x128xf32>
    %7 = vector.shape_cast %6 : vector<64x128xf32> to vector<8x8x128xf32>
    %c0_6 = arith.constant 0 : index
    %c0_7 = arith.constant 0 : index
    %c0_8 = arith.constant 0 : index
    %8 = vector.load %arg9[%c0_6, %c0_7, %c0_8] : memref<8x8x128xf32, #tpu.memory_space<vmem>>, vector<8x8x128xf32>
    tpu.vector_store %arg9[%c0_6, %c0_7, %c0_8], %7 {strides = array<i32>} : memref<8x8x128xf32, #tpu.memory_space<vmem>>, vector<8x8x128xf32>,
    %c0_9 = arith.constant 0 : index
    %c0_10 = arith.constant 0 : index
    %9 = vector.load %arg2[%c0_9, %c0_10] : memref<8x128xf32, #tpu.memory_space<vmem>>, vector<8x128xf32>
    %c0_i32 = arith.constant 0 : i32
    %10 = arith.index_cast %c0_i32 : i32 to index
    %c0_11 = arith.constant 0 : index
    %c0_12 = arith.constant 0 : index
    %11 = vector.load %arg9[%10, %c0_11, %c0_12] : memref<8x8x128xf32, #tpu.memory_space<vmem>>, vector<1x8x128xf32>
    %12 = vector.shape_cast %11 : vector<1x8x128xf32> to vector<8x128xf32>
    %13 = arith.truncf %9 : vector<8x128xf32> to vector<8x128xbf16>
    %c0_13 = arith.constant 0 : index
    %c0_14 = arith.constant 0 : index
    %14 = vector.load %arg4[%c0_13, %c0_14] : memref<128x128xbf16, #tpu.memory_space<vmem>>, vector<128x128xbf16>
    %cst_15 = arith.constant dense<0.000000e+00> : vector<8x128xf32>
    %15 = tpu.matmul %13, %14, %cst_15 {dimension_numbers = #tpu.dot_dimension_numbers<[1], [0], [0], [1], [0, 0, 1, 1], [], []>} : vector<8x128xbf16>, vector<128x128xbf16>, vector<8x128xf32> -> vector<8x128xf32>
    %16 = arith.addf %12, %15 : vector<8x128xf32>
    %17 = math.tanh %16 : vector<8x128xf32>
    %c1_i32 = arith.constant 1 : i32
    %18 = arith.index_cast %c1_i32 : i32 to index
    %c0_16 = arith.constant 0 : index
    %c0_17 = arith.constant 0 : index
    %19 = vector.load %arg9[%18, %c0_16, %c0_17] : memref<8x8x128xf32, #tpu.memory_space<vmem>>, vector<1x8x128xf32>
    %20 = vector.shape_cast %19 : vector<1x8x128xf32> to vector<8x128xf32>
    %21 = arith.truncf %17 : vector<8x128xf32> to vector<8x128xbf16>
    %c0_18 = arith.constant 0 : index
    %c0_19 = arith.constant 0 : index
    %22 = vector.load %arg4[%c0_18, %c0_19] : memref<128x128xbf16, #tpu.memory_space<vmem>>, vector<128x128xbf16>
    %cst_20 = arith.constant dense<0.000000e+00> : vector<8x128xf32>
    %23 = tpu.matmul %21, %22, %cst_20 {dimension_numbers = #tpu.dot_dimension_numbers<[1], [0], [0], [1], [0, 0, 1, 1], [], []>} : vector<8x128xbf16>, vector<128x128xbf16>, vector<8x128xf32> -> vector<8x128xf32>
    %24 = arith.addf %20, %23 : vector<8x128xf32>
    %25 = math.tanh %24 : vector<8x128xf32>
    %c2_i32 = arith.constant 2 : i32
    %26 = arith.index_cast %c2_i32 : i32 to index
    %c0_21 = arith.constant 0 : index
    %c0_22 = arith.constant 0 : index
    %27 = vector.load %arg9[%26, %c0_21, %c0_22] : memref<8x8x128xf32, #tpu.memory_space<vmem>>, vector<1x8x128xf32>
    %28 = vector.shape_cast %27 : vector<1x8x128xf32> to vector<8x128xf32>
    %29 = arith.truncf %25 : vector<8x128xf32> to vector<8x128xbf16>
    %c0_23 = arith.constant 0 : index
    %c0_24 = arith.constant 0 : index
    %30 = vector.load %arg4[%c0_23, %c0_24] : memref<128x128xbf16, #tpu.memory_space<vmem>>, vector<128x128xbf16>
    %cst_25 = arith.constant dense<0.000000e+00> : vector<8x128xf32>
    %31 = tpu.matmul %29, %30, %cst_25 {dimension_numbers = #tpu.dot_dimension_numbers<[1], [0], [0], [1], [0, 0, 1, 1], [], []>} : vector<8x128xbf16>, vector<128x128xbf16>, vector<8x128xf32> -> vector<8x128xf32>
    %32 = arith.addf %28, %31 : vector<8x128xf32>
    %33 = math.tanh %32 : vector<8x128xf32>
    %c3_i32 = arith.constant 3 : i32
    %34 = arith.index_cast %c3_i32 : i32 to index
    %c0_26 = arith.constant 0 : index
    %c0_27 = arith.constant 0 : index
    %35 = vector.load %arg9[%34, %c0_26, %c0_27] : memref<8x8x128xf32, #tpu.memory_space<vmem>>, vector<1x8x128xf32>
    %36 = vector.shape_cast %35 : vector<1x8x128xf32> to vector<8x128xf32>
    %37 = arith.truncf %33 : vector<8x128xf32> to vector<8x128xbf16>
    %c0_28 = arith.constant 0 : index
    %c0_29 = arith.constant 0 : index
    %38 = vector.load %arg4[%c0_28, %c0_29] : memref<128x128xbf16, #tpu.memory_space<vmem>>, vector<128x128xbf16>
    %cst_30 = arith.constant dense<0.000000e+00> : vector<8x128xf32>
    %39 = tpu.matmul %37, %38, %cst_30 {dimension_numbers = #tpu.dot_dimension_numbers<[1], [0], [0], [1], [0, 0, 1, 1], [], []>} : vector<8x128xbf16>, vector<128x128xbf16>, vector<8x128xf32> -> vector<8x128xf32>
    %40 = arith.addf %36, %39 : vector<8x128xf32>
    %41 = math.tanh %40 : vector<8x128xf32>
    %c4_i32 = arith.constant 4 : i32
    %42 = arith.index_cast %c4_i32 : i32 to index
    %c0_31 = arith.constant 0 : index
    %c0_32 = arith.constant 0 : index
    %43 = vector.load %arg9[%42, %c0_31, %c0_32] : memref<8x8x128xf32, #tpu.memory_space<vmem>>, vector<1x8x128xf32>
    %44 = vector.shape_cast %43 : vector<1x8x128xf32> to vector<8x128xf32>
    %45 = arith.truncf %41 : vector<8x128xf32> to vector<8x128xbf16>
    %c0_33 = arith.constant 0 : index
    %c0_34 = arith.constant 0 : index
    %46 = vector.load %arg4[%c0_33, %c0_34] : memref<128x128xbf16, #tpu.memory_space<vmem>>, vector<128x128xbf16>
    %cst_35 = arith.constant dense<0.000000e+00> : vector<8x128xf32>
    %47 = tpu.matmul %45, %46, %cst_35 {dimension_numbers = #tpu.dot_dimension_numbers<[1], [0], [0], [1], [0, 0, 1, 1], [], []>} : vector<8x128xbf16>, vector<128x128xbf16>, vector<8x128xf32> -> vector<8x128xf32>
    %48 = arith.addf %44, %47 : vector<8x128xf32>
    %49 = math.tanh %48 : vector<8x128xf32>
    %c5_i32 = arith.constant 5 : i32
    %50 = arith.index_cast %c5_i32 : i32 to index
    %c0_36 = arith.constant 0 : index
    %c0_37 = arith.constant 0 : index
    %51 = vector.load %arg9[%50, %c0_36, %c0_37] : memref<8x8x128xf32, #tpu.memory_space<vmem>>, vector<1x8x128xf32>
    %52 = vector.shape_cast %51 : vector<1x8x128xf32> to vector<8x128xf32>
    %53 = arith.truncf %49 : vector<8x128xf32> to vector<8x128xbf16>
    %c0_38 = arith.constant 0 : index
    %c0_39 = arith.constant 0 : index
    %54 = vector.load %arg4[%c0_38, %c0_39] : memref<128x128xbf16, #tpu.memory_space<vmem>>, vector<128x128xbf16>
    %cst_40 = arith.constant dense<0.000000e+00> : vector<8x128xf32>
    %55 = tpu.matmul %53, %54, %cst_40 {dimension_numbers = #tpu.dot_dimension_numbers<[1], [0], [0], [1], [0, 0, 1, 1], [], []>} : vector<8x128xbf16>, vector<128x128xbf16>, vector<8x128xf32> -> vector<8x128xf32>
    %56 = arith.addf %52, %55 : vector<8x128xf32>
    %57 = math.tanh %56 : vector<8x128xf32>
    %c6_i32 = arith.constant 6 : i32
    %58 = arith.index_cast %c6_i32 : i32 to index
    %c0_41 = arith.constant 0 : index
    %c0_42 = arith.constant 0 : index
    %59 = vector.load %arg9[%58, %c0_41, %c0_42] : memref<8x8x128xf32, #tpu.memory_space<vmem>>, vector<1x8x128xf32>
    %60 = vector.shape_cast %59 : vector<1x8x128xf32> to vector<8x128xf32>
    %61 = arith.truncf %57 : vector<8x128xf32> to vector<8x128xbf16>
    %c0_43 = arith.constant 0 : index
    %c0_44 = arith.constant 0 : index
    %62 = vector.load %arg4[%c0_43, %c0_44] : memref<128x128xbf16, #tpu.memory_space<vmem>>, vector<128x128xbf16>
    %cst_45 = arith.constant dense<0.000000e+00> : vector<8x128xf32>
    %63 = tpu.matmul %61, %62, %cst_45 {dimension_numbers = #tpu.dot_dimension_numbers<[1], [0], [0], [1], [0, 0, 1, 1], [], []>} : vector<8x128xbf16>, vector<128x128xbf16>, vector<8x128xf32> -> vector<8x128xf32>
    %64 = arith.addf %60, %63 : vector<8x128xf32>
    %65 = math.tanh %64 : vector<8x128xf32>
    %c7_i32 = arith.constant 7 : i32
    %66 = arith.index_cast %c7_i32 : i32 to index
    %c0_46 = arith.constant 0 : index
    %c0_47 = arith.constant 0 : index
    %67 = vector.load %arg9[%66, %c0_46, %c0_47] : memref<8x8x128xf32, #tpu.memory_space<vmem>>, vector<1x8x128xf32>
    %68 = vector.shape_cast %67 : vector<1x8x128xf32> to vector<8x128xf32>
    %69 = arith.truncf %65 : vector<8x128xf32> to vector<8x128xbf16>
    %c0_48 = arith.constant 0 : index
    %c0_49 = arith.constant 0 : index
    %70 = vector.load %arg4[%c0_48, %c0_49] : memref<128x128xbf16, #tpu.memory_space<vmem>>, vector<128x128xbf16>
    %cst_50 = arith.constant dense<0.000000e+00> : vector<8x128xf32>
    %71 = tpu.matmul %69, %70, %cst_50 {dimension_numbers = #tpu.dot_dimension_numbers<[1], [0], [0], [1], [0, 0, 1, 1], [], []>} : vector<8x128xbf16>, vector<128x128xbf16>, vector<8x128xf32> -> vector<8x128xf32>
    %72 = arith.addf %68, %71 : vector<8x128xf32>
    %73 = math.tanh %72 : vector<8x128xf32>
    %c8_i32 = arith.constant 8 : i32
    %74 = arith.truncf %73 : vector<8x128xf32> to vector<8x128xbf16>
    %c0_51 = arith.constant 0 : index
    %c0_52 = arith.constant 0 : index
    %75 = vector.load %arg6[%c0_51, %c0_52] : memref<128x128xbf16, #tpu.memory_space<vmem>>, vector<128x128xbf16>
    %cst_53 = arith.constant dense<0.000000e+00> : vector<8x128xf32>
    %76 = tpu.matmul %74, %75, %cst_53 {dimension_numbers = #tpu.dot_dimension_numbers<[1], [0], [0], [1], [0, 0, 1, 1], [], []>} : vector<8x128xbf16>, vector<128x128xbf16>, vector<8x128xf32> -> vector<8x128xf32>
    %c0_54 = arith.constant 0 : index
    %c0_55 = arith.constant 0 : index
    %77 = vector.load %arg7[%c0_54, %c0_55] : memref<1x128xf32, #tpu.memory_space<vmem>>, vector<1x128xf32>
    %78 = vector.broadcast %77 : vector<1x128xf32> to vector<8x128xf32>
    %79 = arith.addf %76, %78 : vector<8x128xf32>
    %c0_56 = arith.constant 0 : index
    %c0_57 = arith.constant 0 : index
    %80 = vector.load %arg8[%c0_56, %c0_57] : memref<8x128xf32, #tpu.memory_space<vmem>>, vector<8x128xf32>
    tpu.vector_store %arg8[%c0_56, %c0_57], %79 {strides = array<i32>} : memref<8x128xf32, #tpu.memory_space<vmem>>, vector<8x128xf32>,
    return
  }
  func.func @transform_0(%arg0: i32) -> (i32, i32, i32) {
    %c0_i32 = arith.constant 0 : i32
    %c0_i32_0 = arith.constant 0 : i32
    %c0_i32_1 = arith.constant 0 : i32
    return %c0_i32, %arg0, %c0_i32_0 : i32, i32, i32
  }
  func.func @transform_1(%arg0: i32) -> (i32, i32) {
    %c0_i32 = arith.constant 0 : i32
    %c0_i32_0 = arith.constant 0 : i32
    return %arg0, %c0_i32 : i32, i32
  }
  func.func @transform_2(%arg0: i32) -> (i32, i32) {
    %c0_i32 = arith.constant 0 : i32
    %c0_i32_0 = arith.constant 0 : i32
    %c0_i32_1 = arith.constant 0 : i32
    return %c0_i32, %c0_i32_0 : i32, i32
  }
  func.func @transform_3(%arg0: i32) -> (i32, i32) {
    %c0_i32 = arith.constant 0 : i32
    %c0_i32_0 = arith.constant 0 : i32
    %c0_i32_1 = arith.constant 0 : i32
    return %c0_i32, %c0_i32_0 : i32, i32
  }
  func.func @transform_4(%arg0: i32) -> (i32, i32) {
    %c0_i32 = arith.constant 0 : i32
    %c0_i32_0 = arith.constant 0 : i32
    %c0_i32_1 = arith.constant 0 : i32
    return %c0_i32, %c0_i32_0 : i32, i32
  }
  func.func @transform_5(%arg0: i32) -> (i32, i32) {
    %c0_i32 = arith.constant 0 : i32
    %c0_i32_0 = arith.constant 0 : i32
    %c0_i32_1 = arith.constant 0 : i32
    return %c0_i32, %c0_i32_0 : i32, i32
  }
  func.func @transform_6(%arg0: i32) -> (i32, i32) {
    %c0_i32 = arith.constant 0 : i32
    %c0_i32_0 = arith.constant 0 : i32
    %c0_i32_1 = arith.constant 0 : i32
    return %c0_i32, %c0_i32_0 : i32, i32
  }
  func.func @transform_7(%arg0: i32) -> (i32, i32) {
    %c0_i32 = arith.constant 0 : i32
    %c0_i32_0 = arith.constant 0 : i32
    return %arg0, %c0_i32 : i32, i32
  }
}

</mosaic_0001>

<bundles_post_ra>
// kernel: tpu_custom_call.1
= control target key start
LH: loop header
LB: loop body
LE: loop exit
PB: predicated region body
PF: predicated region fallthrough
CT: control target
= control target key end

     0   :  { %12 = vsyncpa [#allocation4], 0  ;;  %s1680_s0 = inlined_call_operand.hbm [shape: bf16[8,8,128], index: 0, kind: input, shape index: {}]   ;;  %s1681_s1 = inlined_call_operand.hbm [shape: f32[8,128], index: 1, kind: input, shape index: {}]   ;;  %s1682_s2 = inlined_call_operand.hbm [shape: bf16[128,128], index: 2, kind: input, shape index: {}]   ;;  %s1683_s3 = inlined_call_operand.hbm [shape: bf16[128,128], index: 3, kind: input, shape index: {}]   ;;  %s1684_s4 = inlined_call_operand.vmem [shape: f32[1,128], index: 4, kind: input, shape index: {}]   ;;  %s1685_s5 = inlined_call_operand.hbm [shape: bf16[128,128], index: 5, kind: input, shape index: {}]   ;;  %s1686_s6 = inlined_call_operand.vmem [shape: f32[1,128], index: 6, kind: input, shape index: {}]   ;;  %s1687_s7 = inlined_call_operand.hbm [shape: f32[8,128], index: 7, kind: output, shape index: {}]  }
   0x1   :  { %13 = vsyncpa [#allocation7], 0 }
   0x2   :  { %14 = vsyncpa [#allocation10], 0 }
   0x3   :  { %15 = vsyncpa [#allocation5], 0  ;;  %s1345_s24 = smov [#allocation6]   ;;  %s1205_s28 = scalar_lea.hbm %s1681_s1, 128 }
   0x4   :  { %s34_s25 = sshll.u32 %s1345_s24, 4  ;;  %p1206_p0 = scmp.ne.s32.totalorder %s1681_s1, %s1205_s28  ;;  %s35_s25 = int_to_ptr.vmem [resolvable:$true] %s34_s25 }
   0x5   :  { %p1209_p1 = scmp.lt.u32.totalorder %s1205_s28, %s1681_s1 }
   0x7   :  { %p1211_p2 = pnand %p1209_p1, %p1206_p0 }
   0x9   :  { %1214 = shalt.err (!%p1211_p2)
}
   0xa   :  { %s1215_s10 = scalar_lea.vmem %s35_s25, 128  ;;  %p1220_p4 = scmp.lt.s32.totalorder %s35_s25, %s35_s25 }
   0xb   :  { %p1216_p3 = scmp.ne.s32.totalorder %s35_s25, %s1215_s10  ;;  %p1221_p5 = scmp.lt.s32.totalorder %s1215_s10, %s1215_s10 }
   0xd   :  { %p1222_p6 = por %p1221_p5, %p1220_p4 }
   0xf   :  { %p1223_p7 = pnand %p1222_p6, %p1216_p3 }
  0x11   :  { %1226 = shalt.err (!%p1223_p7)
}
  0x12   :  { %37 = dma.hbm_to_vmem [thread:$0]  %s1681_s1, 128, %s35_s25, [#allocation7]  }
  0x13   :  { %s1346_s13 = smov [#allocation9]   ;;  %s1347_s15 = smov [#allocation3]  }
  0x14   :  { %s55_s14 = sshll.u32 %s1346_s13, 4  ;;  %s21_s16 = sshll.u32 %s1347_s15, 4  ;;  %s56_s14 = int_to_ptr.vmem [resolvable:$true] %s55_s14  ;;  %s22_s16 = int_to_ptr.vmem [resolvable:$true] %s21_s16 }
  0x15   :  { %s1227_s19 = scalar_lea.hbm %s1683_s3, 1024 }
  0x16   :  { %p1228_p8 = scmp.ne.s32.totalorder %s1683_s3, %s1227_s19  ;;  %p1231_p9 = scmp.lt.u32.totalorder %s1227_s19, %s1683_s3 }
  0x18   :  { %p1233_p10 = pnand %p1231_p9, %p1228_p8 }
  0x1a   :  { %1236 = shalt.err (!%p1233_p10)
}
  0x1b   :  { %s1237_s1 = scalar_lea.vmem %s56_s14, 1024  ;;  %p1242_p12 = scmp.lt.s32.totalorder %s56_s14, %s56_s14 }
  0x1c   :  { %p1238_p11 = scmp.ne.s32.totalorder %s56_s14, %s1237_s1  ;;  %p1243_p13 = scmp.lt.s32.totalorder %s1237_s1, %s1237_s1 }
  0x1e   :  { %p1244_p0 = por %p1243_p13, %p1242_p12 }
  0x20   :  { %p1245_p1 = pnand %p1244_p0, %p1238_p11 }
  0x22   :  { %1248 = shalt.err (!%p1245_p1)
}
  0x23   :  { %s1348_s24 = smov 64   ;;  %s1349_s25 = smov 4  }
  0x24   :  { %61 = dma.hbm_to_vmem [thread:$0]  %s1683_s3, 1024, %s56_s14, [#allocation10], %s1348_s24, %s1348_s24, %s1349_s25  }
  0x25   :  { %s1249_s30 = scalar_lea.hbm %s1680_s0, 512 }
  0x26   :  { %p1250_p2 = scmp.ne.s32.totalorder %s1680_s0, %s1249_s30  ;;  %p1253_p3 = scmp.lt.u32.totalorder %s1249_s30, %s1680_s0 }
  0x28   :  { %p1255_p4 = pnand %p1253_p3, %p1250_p2 }
  0x2a   :  { %1258 = shalt.err (!%p1255_p4)
}
  0x2b   :  { %s1259_s12 = scalar_lea.vmem %s22_s16, 512  ;;  %p1264_p6 = scmp.lt.s32.totalorder %s22_s16, %s22_s16 }
  0x2c   :  { %p1260_p5 = scmp.ne.s32.totalorder %s22_s16, %s1259_s12  ;;  %p1265_p7 = scmp.lt.s32.totalorder %s1259_s12, %s1259_s12 }
  0x2e   :  { %p1266_p8 = por %p1265_p7, %p1264_p6 }
  0x30   :  { %p1267_p9 = pnand %p1266_p8, %p1260_p5 }
  0x32   :  { %1270 = shalt.err (!%p1267_p9)
}
  0x33   :  { %27 = dma.hbm_to_vmem [thread:$0]  %s1680_s0, 512, %s22_s16, [#allocation4], %s1348_s24, %s1348_s24, %s1349_s25  }
  0x34   :  { %s1350_s14 = smov [#allocation8]   ;;  %s1351_s17 = smov [#allocation11]  }
  0x35   :  { %s43_s15 = sshll.u32 %s1350_s14, 4  ;;  %s69_s18 = sshll.u32 %s1351_s17, 4  ;;  %s44_s15 = int_to_ptr.vmem [resolvable:$true] %s43_s15  ;;  %s70_s18 = int_to_ptr.vmem [resolvable:$true] %s69_s18 }
  0x36   :  { %s1271_s21 = scalar_lea.hbm %s1682_s2, 1024 }
  0x37   :  { %p1272_p10 = scmp.ne.s32.totalorder %s1682_s2, %s1271_s21  ;;  %p1275_p11 = scmp.lt.u32.totalorder %s1271_s21, %s1682_s2 }
  0x39   :  { %p1277_p12 = pnand %p1275_p11, %p1272_p10 }
  0x3b   :  { %1280 = shalt.err (!%p1277_p12)
}
  0x3c   :  { %s1281_s0 = scalar_lea.vmem %s44_s15, 1024  ;;  %p1286_p0 = scmp.lt.s32.totalorder %s44_s15, %s44_s15 }
  0x3d   :  { %p1282_p13 = scmp.ne.s32.totalorder %s44_s15, %s1281_s0  ;;  %p1287_p1 = scmp.lt.s32.totalorder %s1281_s0, %s1281_s0 }
  0x3f   :  { %p1288_p2 = por %p1287_p1, %p1286_p0 }
  0x41   :  { %p1289_p3 = pnand %p1288_p2, %p1282_p13 }
  0x43   :  { %1292 = shalt.err (!%p1289_p3)
}
  0x44   :  { %49 = dma.hbm_to_vmem [thread:$0]  %s1682_s2, 1024, %s44_s15, [#allocation7], %s1348_s24, %s1348_s24, %s1349_s25  }
  0x45   :  { %s1293_s30 = scalar_lea.hbm %s1685_s5, 1024 }
  0x46   :  { %p1294_p4 = scmp.ne.s32.totalorder %s1685_s5, %s1293_s30  ;;  %p1297_p5 = scmp.lt.u32.totalorder %s1293_s30, %s1685_s5 }
  0x48   :  { %p1299_p6 = pnand %p1297_p5, %p1294_p4 }
  0x4a   :  { %1302 = shalt.err (!%p1299_p6)
}
  0x4b   :  { %s1303_s12 = scalar_lea.vmem %s70_s18, 1024  ;;  %p1308_p8 = scmp.lt.s32.totalorder %s70_s18, %s70_s18 }
  0x4c   :  { %p1304_p7 = scmp.ne.s32.totalorder %s70_s18, %s1303_s12  ;;  %p1309_p9 = scmp.lt.s32.totalorder %s1303_s12, %s1303_s12 }
  0x4e   :  { %p1310_p10 = por %p1309_p9, %p1308_p8 }
  0x50   :  { %p1311_p11 = pnand %p1310_p10, %p1304_p7 }
  0x52   :  { %1314 = shalt.err (!%p1311_p11)
}
  0x53   :  { %75 = dma.hbm_to_vmem [thread:$0]  %s1685_s5, 1024, %s70_s18, [#allocation10], %s1348_s24, %s1348_s24, %s1349_s25  }
  0x54   :  { %1337 = dma.done.wait [#allocation4], 512  }
  0x55   :  { %1338 = vsyncadd [#allocation4], 4294966784 }
  0x56   :  { %1339 = dma.done.wait [#allocation7], 1152  }
  0x57   :  { %1340 = vsyncadd [#allocation7], 4294966144 }
  0x58   :  { %1341 = dma.done.wait [#allocation10], 2048  }
  0x59   :  { %1342 = vsyncadd [#allocation10], 4294965248  ;;  %v1352_v0 = vmov 0.0   ;;  %vm1353_vm0 = vmmov 0   ;;  %v1161_v1 = vld [vmem:[#allocation8] sm:$0xff]   ;;  %v1163_v3 = vld [vmem:[#allocation8 + $0x8] sm:$0xff]  }
  0x5a   :  { %971 = vmatprep.subr.bf16.mxu1 %v1352_v0  ;;  %987 = vmatprep.mubr.msk.bf16.mxu1 %vm1353_vm0, %v1352_v0  ;;  %v1470_v2 = vld [vmem:[#allocation9] sm:$0xff]   ;;  %v1473_v4 = vld [vmem:[#allocation9 + $0x8] sm:$0xff]   ;;  %v1165_v5 = vld [vmem:[#allocation8 + $0x10] sm:$0xff]   ;;  %s1354_s13 = smov [#allocation12]  }
  0x5b   :  { %947 = vmatprep.subr.bf16.mxu0 %v1161_v1  ;;  %972 = vmatpush3.bf16.msra.mxu1 %v1470_v2  ;;  %v1477_v6 = vld [vmem:[#allocation9 + $0x10] sm:$0xff]   ;;  %v1167_v7 = vld [vmem:[#allocation8 + $0x18] sm:$0xff]   ;;  %v1169_v9 = vld [vmem:[#allocation8 + $0x20] sm:$0xff]   ;;  %s813_s14 = sshll.u32 %s1354_s13, 4  ;;  %s814_s14 = int_to_ptr.vmem [resolvable:$true] %s813_s14 }
  0x5c   :  { %948 = vmatpush3.bf16.msra.mxu0 %v1161_v1  ;;  %973 = vmatprep.subr.bf16.mxu1 %v1352_v0  ;;  %v1481_v8 = vld [vmem:[#allocation9 + $0x18] sm:$0xff]   ;;  %v1484_v10 = vld [vmem:[#allocation9 + $0x20] sm:$0xff]   ;;  %v1171_v11 = vld [vmem:[#allocation8 + $0x28] sm:$0xff]   ;;  %s1315_s15 = scalar_lea.vmem %s814_s14, 128  ;;  %p1320_p13 = scmp.lt.s32.totalorder %s814_s14, %s814_s14 }
  0x5d   :  { %949 = vmatprep.subr.bf16.mxu0 %v1163_v3  ;;  %v1177_v12 = vld [vmem:[#allocation3] sm:$0xff]   ;;  %v1488_v13 = vld [vmem:[#allocation9 + $0x28] sm:$0xff]   ;;  %v1173_v14 = vld [vmem:[#allocation8 + $0x30] sm:$0xff]   ;;  %p1316_p12 = scmp.ne.s32.totalorder %s814_s14, %s1315_s15  ;;  %p1321_p0 = scmp.lt.s32.totalorder %s1315_s15, %s1315_s15 }
  0x5e   :  { %963 = vmatprep.mubr.bf16.mxu0 %v1177_v12  ;;  %v1492_v15 = vld [vmem:[#allocation9 + $0x30] sm:$0xff]   ;;  %v1175_v16 = vld [vmem:[#allocation8 + $0x38] sm:$0xff]   ;;  %v1178_v19 = vld [vmem:[#allocation3 + $0x8] sm:$0xff]  }
  0x5f   :  { %974 = vmatpush3.bf16.msra.mxu1 %v1473_v4  ;;  %v1497_v17 = vld [vmem:[#allocation9 + $0x38] sm:$0xff]   ;;  %v1179_v21 = vld [vmem:[#allocation3 + $0x10] sm:$0xff]   ;;  %v1180_v22 = vld [vmem:[#allocation3 + $0x18] sm:$0xff]   ;;  %p1322_p1 = por %p1321_p0, %p1320_p13 }
  0x60   :  { %950 = vmatpush3.bf16.msra.mxu0 %v1163_v3  ;;  %975 = vmatprep.subr.bf16.mxu1 %v1352_v0  ;;  %v270_v18 = vld [vmem:[#allocation6] sm:$0xff] }
  0x61   :  { %951 = vmatprep.subr.bf16.mxu0 %v1165_v5  ;;  %v272_v20 = vpack.c.bf16 %v270_v18, %v270_v18  ;;  %v1542_v23 = vld [vmem:[%s1684_s4] ss:$0 sm:$0xff]  ;;  %p1323_p2 = pnand %p1322_p1, %p1316_p12 }
  0x63   :  { %976 = vmatpush3.bf16.msra.mxu1 %v1477_v6 }
  0x64   :  { %952 = vmatpush3.bf16.msra.mxu0 %v1165_v5  ;;  %977 = vmatprep.subr.bf16.mxu1 %v1352_v0 }
  0x65   :  { %953 = vmatprep.subr.bf16.mxu0 %v1167_v7 }
  0x67   :  { %978 = vmatpush3.bf16.msra.mxu1 %v1481_v8 }
  0x68   :  { %954 = vmatpush3.bf16.msra.mxu0 %v1167_v7  ;;  %979 = vmatprep.subr.bf16.mxu1 %v1352_v0 }
  0x69   :  { %955 = vmatprep.subr.bf16.mxu0 %v1169_v9 }
  0x6b   :  { %980 = vmatpush3.bf16.msra.mxu1 %v1484_v10 }
  0x6c   :  { %956 = vmatpush3.bf16.msra.mxu0 %v1169_v9  ;;  %981 = vmatprep.subr.bf16.mxu1 %v1352_v0 }
  0x6d   :  { %957 = vmatprep.subr.bf16.mxu0 %v1171_v11 }
  0x6f   :  { %982 = vmatpush3.bf16.msra.mxu1 %v1488_v13 }
  0x70   :  { %958 = vmatpush3.bf16.msra.mxu0 %v1171_v11  ;;  %983 = vmatprep.subr.bf16.mxu1 %v1352_v0 }
  0x71   :  { %959 = vmatprep.subr.bf16.mxu0 %v1173_v14 }
  0x73   :  { %984 = vmatpush3.bf16.msra.mxu1 %v1492_v15 }
  0x74   :  { %960 = vmatpush3.bf16.msra.mxu0 %v1173_v14  ;;  %985 = vmatprep.subr.bf16.mxu1 %v1352_v0 }
  0x75   :  { %961 = vmatprep.subr.bf16.mxu0 %v1175_v16 }
  0x77   :  { %986 = vmatpush3.bf16.msra.mxu1 %v1497_v17 }
  0x78   :  { %962 = vmatpush3.bf16.msra.mxu0 %v1175_v16  ;;  %1011 = vmatprep.subr.bf16.mxu1 %v1352_v0 }
  0x79   :  { %991 = vmatprep.subr.bf16.mxu0 %v1352_v0 }
  0x7a   :  { %988 = vmatmul.mubr.bf16.vlgmr.msra.gmra.mrb[0].mxu1 %v272_v20  ;;  %v1184_v20 = vld [vmem:[#allocation11 + $0x18] sm:$0xff]  }
  0x7b   :  { %964 = vmatmul.mubr.bf16.vlgmr.msra.gmra.mrb[0].mxu0 %v1178_v19  ;;  %1012 = vmatpush3.bf16.msra.mxu1 %v1470_v2 }
  0x7c   :  { %992 = vmatpush3.bf16.msra.mxu0 %v1470_v2  ;;  %1013 = vmatprep.subr.bf16.mxu1 %v1352_v0 }
  0x7d   :  { %993 = vmatprep.subr.bf16.mxu0 %v1352_v0  ;;  %1027 = vmatprep.mubr.msk.bf16.mxu1 %vm1353_vm0, %v1352_v0 }
  0x7e   :  { %967 = vmatprep.mubr.bf16.mxu0 %v1179_v21 }
  0x7f   :  { %1014 = vmatpush3.bf16.msra.mxu1 %v1473_v4 }
  0x80   :  { %994 = vmatpush3.bf16.msra.mxu0 %v1473_v4  ;;  %1015 = vmatprep.subr.bf16.mxu1 %v1352_v0 }
  0x81   :  { %995 = vmatprep.subr.bf16.mxu0 %v1352_v0 }
  0x83   :  { %1016 = vmatpush3.bf16.msra.mxu1 %v1477_v6  ;;  %968 = vmatmul.mubr.bf16.gmra.mrb[4].mxu0 %v1180_v22 }
  0x84   :  { %996 = vmatpush3.bf16.msra.mxu0 %v1477_v6  ;;  %1017 = vmatprep.subr.bf16.mxu1 %v1352_v0 }
  0x85   :  { %997 = vmatprep.subr.bf16.mxu0 %v1352_v0  ;;  %1007 = vmatprep.mubr.msk.bf16.mxu0 %vm1353_vm0, %v1352_v0 }
  0x87   :  { %1018 = vmatpush3.bf16.msra.mxu1 %v1481_v8 }
  0x88   :  { %998 = vmatpush3.bf16.msra.mxu0 %v1481_v8  ;;  %1019 = vmatprep.subr.bf16.mxu1 %v1352_v0 }
  0x89   :  { %999 = vmatprep.subr.bf16.mxu0 %v1352_v0 }
  0x8b   :  { %1020 = vmatpush3.bf16.msra.mxu1 %v1484_v10 }
  0x8c   :  { %1000 = vmatpush3.bf16.msra.mxu0 %v1484_v10  ;;  %1021 = vmatprep.subr.bf16.mxu1 %v1352_v0 }
  0x8d   :  { %1001 = vmatprep.subr.bf16.mxu0 %v1352_v0 }
  0x8f   :  { %1022 = vmatpush3.bf16.msra.mxu1 %v1488_v13 }
  0x90   :  { %1002 = vmatpush3.bf16.msra.mxu0 %v1488_v13  ;;  %1023 = vmatprep.subr.bf16.mxu1 %v1352_v0 }
  0x91   :  { %1003 = vmatprep.subr.bf16.mxu0 %v1352_v0 }
  0x93   :  { %1024 = vmatpush3.bf16.msra.mxu1 %v1492_v15 }
  0x94   :  { %1004 = vmatpush3.bf16.msra.mxu0 %v1492_v15  ;;  %1025 = vmatprep.subr.bf16.mxu1 %v1352_v0 }
  0x95   :  { %1005 = vmatprep.subr.bf16.mxu0 %v1352_v0 }
  0x97   :  { %1026 = vmatpush3.bf16.msra.mxu1 %v1497_v17 }
  0x98   :  { %1006 = vmatpush3.bf16.msra.mxu0 %v1497_v17  ;;  %1051 = vmatprep.subr.bf16.mxu1 %v1352_v0 }
  0x99   :  { %1031 = vmatprep.subr.bf16.mxu0 %v1352_v0 }
 0x14d   :  { %v371_v25 = vpop.f32.mrb[0].mxu1 }
 0x14e   :  { %v965_v24 = vpop.f32.mrb[0].mxu0  ;;  %v989_v27 = vpop.f32.mrb[1].mxu1 }
 0x14f   :  { %v231_v26 = vpop.f32.mrb[1].mxu0  ;;  %v374_v30 = vpop.f32.mrb[2].mxu1  ;;  %v240_v48 = vadd.f32 %v965_v24, %v1542_v23 }
 0x150   :  { %v232_v28 = vadd.f32 %v1542_v23, %v231_v26  ;;  %v1545_v29 = vpop.f32.mrb[2].mxu0  ;;  %v990_v32 = vpop.f32.mrb[3].mxu1  ;;  %v1185_v30 = vld [vmem:[#allocation11 + $0x20] sm:$0xff]  }
 0x151   :  { %v234_v31 = vpop.f32.mrb[3].mxu0  ;;  %v243_v56 = vadd.f32 %v1545_v29, %v1542_v23  ;;  %v1187_v32 = vld [vmem:[#allocation11 + $0x30] sm:$0xff]  }
 0x152   :  { %v377_v33 = vadd.f32 %v371_v25, %v232_v28  ;;  %v235_v40 = vadd.f32 %v1542_v23, %v234_v31  ;;  %v1186_v31 = vld [vmem:[#allocation11 + $0x28] sm:$0xff]  }
 0x154   :  { %1189 = vtanh.f32 %v377_v33  ;;  %v1188_v33 = vld [vmem:[#allocation11 + $0x38] sm:$0xff]  }
 0x156   :  { %v1565_v36 = vpop.f32.mrb[4].mxu0 }
 0x157   :  { %v1567_v37 = vpop.f32.mrb[5].mxu0  ;;  %v256_v21 = vadd.f32 %v1565_v36, %v1542_v23 }
 0x158   :  { %v1569_v38 = vpop.f32.mrb[6].mxu0  ;;  %v248_v1 = vadd.f32 %v1542_v23, %v1567_v37 }
 0x159   :  { %v1571_v39 = vpop.f32.mrb[7].mxu0 }
 0x15e   :  { %v1190_v34 = vpop.eup %1189 }
 0x15f   :  { %v381_v35 = vpack.c.bf16 %v1190_v34, %v1190_v34  ;;  %v259_v34 = vadd.f32 %v1569_v38, %v1542_v23 }
 0x161   :  { %1008 = vmatmul.mubr.bf16.vlgmr.msra.gmra.mrb[8].mxu0 %v381_v35 }
 0x162   :  { %1032 = vmatpush3.bf16.msra.mxu0 %v1470_v2  ;;  %1047 = vmatprep.mubr.msk.bf16.mxu0 %vm1353_vm0, %v1352_v0 }
 0x163   :  { %1033 = vmatprep.subr.bf16.mxu0 %v1352_v0 }
 0x166   :  { %1034 = vmatpush3.bf16.msra.mxu0 %v1473_v4 }
 0x167   :  { %1035 = vmatprep.subr.bf16.mxu0 %v1352_v0 }
 0x16a   :  { %1036 = vmatpush3.bf16.msra.mxu0 %v1477_v6 }
 0x16b   :  { %1037 = vmatprep.subr.bf16.mxu0 %v1352_v0 }
 0x16e   :  { %1038 = vmatpush3.bf16.msra.mxu0 %v1481_v8 }
 0x16f   :  { %1039 = vmatprep.subr.bf16.mxu0 %v1352_v0 }
 0x172   :  { %1040 = vmatpush3.bf16.msra.mxu0 %v1484_v10 }
 0x173   :  { %1041 = vmatprep.subr.bf16.mxu0 %v1352_v0 }
 0x176   :  { %1042 = vmatpush3.bf16.msra.mxu0 %v1488_v13 }
 0x177   :  { %1043 = vmatprep.subr.bf16.mxu0 %v1352_v0 }
 0x17a   :  { %1044 = vmatpush3.bf16.msra.mxu0 %v1492_v15 }
 0x17b   :  { %1045 = vmatprep.subr.bf16.mxu0 %v1352_v0 }
 0x17e   :  { %1046 = vmatpush3.bf16.msra.mxu0 %v1497_v17 }
 0x17f   :  { %1071 = vmatprep.subr.bf16.mxu0 %v1352_v0 }
 0x234   :  { %v416_v41 = vpop.f32.mrb[8].mxu0 }
 0x235   :  { %v422_v42 = vadd.f32 %v416_v41, %v235_v40  ;;  %v1009_v43 = vpop.f32.mrb[9].mxu0 }
 0x236   :  { %v419_v44 = vpop.f32.mrb[10].mxu0  ;;  %v845_v43 = vld [vmem:[%s1686_s6] ss:$0 sm:$0xff] }
 0x237   :  { %1191 = vtanh.f32 %v422_v42  ;;  %v1010_v45 = vpop.f32.mrb[11].mxu0 }
 0x241   :  { %v1192_v46 = vpop.eup %1191 }
 0x242   :  { %v426_v47 = vpack.c.bf16 %v1192_v46, %v1192_v46 }
 0x244   :  { %1028 = vmatmul.mubr.bf16.vlgmr.msra.gmra.mrb[4].mxu1 %v426_v47 }
 0x245   :  { %1052 = vmatpush3.bf16.msra.mxu1 %v1470_v2  ;;  %1067 = vmatprep.mubr.msk.bf16.mxu1 %vm1353_vm0, %v1352_v0 }
 0x246   :  { %1053 = vmatprep.subr.bf16.mxu1 %v1352_v0 }
 0x249   :  { %1054 = vmatpush3.bf16.msra.mxu1 %v1473_v4 }
 0x24a   :  { %1055 = vmatprep.subr.bf16.mxu1 %v1352_v0 }
 0x24d   :  { %1056 = vmatpush3.bf16.msra.mxu1 %v1477_v6 }
 0x24e   :  { %1057 = vmatprep.subr.bf16.mxu1 %v1352_v0 }
 0x251   :  { %1058 = vmatpush3.bf16.msra.mxu1 %v1481_v8 }
 0x252   :  { %1059 = vmatprep.subr.bf16.mxu1 %v1352_v0 }
 0x255   :  { %1060 = vmatpush3.bf16.msra.mxu1 %v1484_v10 }
 0x256   :  { %1061 = vmatprep.subr.bf16.mxu1 %v1352_v0 }
 0x259   :  { %1062 = vmatpush3.bf16.msra.mxu1 %v1488_v13 }
 0x25a   :  { %1063 = vmatprep.subr.bf16.mxu1 %v1352_v0 }
 0x25d   :  { %1064 = vmatpush3.bf16.msra.mxu1 %v1492_v15 }
 0x25e   :  { %1065 = vmatprep.subr.bf16.mxu1 %v1352_v0 }
 0x261   :  { %1066 = vmatpush3.bf16.msra.mxu1 %v1497_v17 }
 0x262   :  { %1091 = vmatprep.subr.bf16.mxu1 %v1352_v0 }
 0x317   :  { %v461_v49 = vpop.f32.mrb[4].mxu1 }
 0x318   :  { %v467_v50 = vadd.f32 %v461_v49, %v240_v48  ;;  %v1029_v51 = vpop.f32.mrb[5].mxu1 }
 0x319   :  { %v464_v52 = vpop.f32.mrb[6].mxu1 }
 0x31a   :  { %1193 = vtanh.f32 %v467_v50  ;;  %v1030_v53 = vpop.f32.mrb[7].mxu1 }
 0x324   :  { %v1194_v54 = vpop.eup %1193 }
 0x325   :  { %v471_v55 = vpack.c.bf16 %v1194_v54, %v1194_v54 }
 0x327   :  { %1048 = vmatmul.mubr.bf16.vlgmr.msra.gmra.mrb[12].mxu0 %v471_v55 }
 0x328   :  { %1072 = vmatpush3.bf16.msra.mxu0 %v1470_v2  ;;  %1087 = vmatprep.mubr.msk.bf16.mxu0 %vm1353_vm0, %v1352_v0 }
 0x329   :  { %1073 = vmatprep.subr.bf16.mxu0 %v1352_v0 }
 0x32c   :  { %1074 = vmatpush3.bf16.msra.mxu0 %v1473_v4 }
 0x32d   :  { %1075 = vmatprep.subr.bf16.mxu0 %v1352_v0 }
 0x330   :  { %1076 = vmatpush3.bf16.msra.mxu0 %v1477_v6 }
 0x331   :  { %1077 = vmatprep.subr.bf16.mxu0 %v1352_v0 }
 0x334   :  { %1078 = vmatpush3.bf16.msra.mxu0 %v1481_v8 }
 0x335   :  { %1079 = vmatprep.subr.bf16.mxu0 %v1352_v0 }
 0x338   :  { %1080 = vmatpush3.bf16.msra.mxu0 %v1484_v10 }
 0x339   :  { %1081 = vmatprep.subr.bf16.mxu0 %v1352_v0 }
 0x33c   :  { %1082 = vmatpush3.bf16.msra.mxu0 %v1488_v13 }
 0x33d   :  { %1083 = vmatprep.subr.bf16.mxu0 %v1352_v0 }
 0x340   :  { %1084 = vmatpush3.bf16.msra.mxu0 %v1492_v15 }
 0x341   :  { %1085 = vmatprep.subr.bf16.mxu0 %v1352_v0 }
 0x344   :  { %1086 = vmatpush3.bf16.msra.mxu0 %v1497_v17 }
 0x345   :  { %1111 = vmatprep.subr.bf16.mxu0 %v1352_v0 }
 0x3fa   :  { %v506_v57 = vpop.f32.mrb[12].mxu0 }
 0x3fb   :  { %v512_v58 = vadd.f32 %v506_v57, %v243_v56  ;;  %v1049_v59 = vpop.f32.mrb[13].mxu0 }
 0x3fc   :  { %v509_v60 = vpop.f32.mrb[14].mxu0 }
 0x3fd   :  { %1195 = vtanh.f32 %v512_v58  ;;  %v1050_v61 = vpop.f32.mrb[15].mxu0 }
 0x407   :  { %v1196_v62 = vpop.eup %1195 }
 0x408   :  { %v516_v63 = vpack.c.bf16 %v1196_v62, %v1196_v62 }
 0x40a   :  { %1068 = vmatmul.mubr.bf16.vlgmr.msra.gmra.mrb[8].mxu1 %v516_v63 }
 0x40b   :  { %1092 = vmatpush3.bf16.msra.mxu1 %v1470_v2  ;;  %1107 = vmatprep.mubr.msk.bf16.mxu1 %vm1353_vm0, %v1352_v0 }
 0x40c   :  { %1093 = vmatprep.subr.bf16.mxu1 %v1352_v0 }
 0x40f   :  { %1094 = vmatpush3.bf16.msra.mxu1 %v1473_v4 }
 0x410   :  { %1095 = vmatprep.subr.bf16.mxu1 %v1352_v0 }
 0x413   :  { %1096 = vmatpush3.bf16.msra.mxu1 %v1477_v6 }
 0x414   :  { %1097 = vmatprep.subr.bf16.mxu1 %v1352_v0 }
 0x417   :  { %1098 = vmatpush3.bf16.msra.mxu1 %v1481_v8 }
 0x418   :  { %1099 = vmatprep.subr.bf16.mxu1 %v1352_v0 }
 0x41b   :  { %1100 = vmatpush3.bf16.msra.mxu1 %v1484_v10 }
 0x41c   :  { %1101 = vmatprep.subr.bf16.mxu1 %v1352_v0 }
 0x41f   :  { %1102 = vmatpush3.bf16.msra.mxu1 %v1488_v13 }
 0x420   :  { %1103 = vmatprep.subr.bf16.mxu1 %v1352_v0 }
 0x423   :  { %1104 = vmatpush3.bf16.msra.mxu1 %v1492_v15 }
 0x424   :  { %1105 = vmatprep.subr.bf16.mxu1 %v1352_v0 }
 0x427   :  { %1106 = vmatpush3.bf16.msra.mxu1 %v1497_v17 }
 0x428   :  { %1131 = vmatprep.subr.bf16.mxu1 %v1352_v0 }
 0x4dd   :  { %v551_v3 = vpop.f32.mrb[8].mxu1 }
 0x4de   :  { %v557_v5 = vadd.f32 %v551_v3, %v248_v1  ;;  %v1069_v7 = vpop.f32.mrb[9].mxu1 }
 0x4df   :  { %v554_v9 = vpop.f32.mrb[10].mxu1 }
 0x4e0   :  { %1197 = vtanh.f32 %v557_v5  ;;  %v1070_v11 = vpop.f32.mrb[11].mxu1 }
 0x4ea   :  { %v1198_v12 = vpop.eup %1197 }
 0x4eb   :  { %v561_v14 = vpack.c.bf16 %v1198_v12, %v1198_v12 }
 0x4ed   :  { %1088 = vmatmul.mubr.bf16.vlgmr.msra.gmra.mrb[16].mxu0 %v561_v14 }
 0x4ee   :  { %1112 = vmatpush3.bf16.msra.mxu0 %v1470_v2  ;;  %1127 = vmatprep.mubr.msk.bf16.mxu0 %vm1353_vm0, %v1352_v0  ;;  %v251_v2 = vadd.f32 %v1542_v23, %v1571_v39 }
 0x4ef   :  { %1113 = vmatprep.subr.bf16.mxu0 %v1352_v0 }
 0x4f2   :  { %1114 = vmatpush3.bf16.msra.mxu0 %v1473_v4 }
 0x4f3   :  { %1115 = vmatprep.subr.bf16.mxu0 %v1352_v0 }
 0x4f6   :  { %1116 = vmatpush3.bf16.msra.mxu0 %v1477_v6 }
 0x4f7   :  { %1117 = vmatprep.subr.bf16.mxu0 %v1352_v0 }
 0x4fa   :  { %1118 = vmatpush3.bf16.msra.mxu0 %v1481_v8 }
 0x4fb   :  { %1119 = vmatprep.subr.bf16.mxu0 %v1352_v0 }
 0x4fe   :  { %1120 = vmatpush3.bf16.msra.mxu0 %v1484_v10 }
 0x4ff   :  { %1121 = vmatprep.subr.bf16.mxu0 %v1352_v0 }
 0x502   :  { %1122 = vmatpush3.bf16.msra.mxu0 %v1488_v13  ;;  %v1181_v13 = vld [vmem:[#allocation11] sm:$0xff]  }
 0x503   :  { %1123 = vmatprep.subr.bf16.mxu0 %v1352_v0 }
 0x506   :  { %1124 = vmatpush3.bf16.msra.mxu0 %v1492_v15  ;;  %v1182_v15 = vld [vmem:[#allocation11 + $0x8] sm:$0xff]  }
 0x507   :  { %1125 = vmatprep.subr.bf16.mxu0 %v1352_v0 }
 0x50a   :  { %1126 = vmatpush3.bf16.msra.mxu0 %v1497_v17  ;;  %v1183_v17 = vld [vmem:[#allocation11 + $0x10] sm:$0xff]  }
 0x5c0   :  { %v596_v4 = vpop.f32.mrb[16].mxu0 }
 0x5c1   :  { %v602_v6 = vadd.f32 %v596_v4, %v251_v2  ;;  %v1089_v8 = vpop.f32.mrb[17].mxu0 }
 0x5c2   :  { %v599_v16 = vpop.f32.mrb[18].mxu0 }
 0x5c3   :  { %1199 = vtanh.f32 %v602_v6  ;;  %v1090_v10 = vpop.f32.mrb[19].mxu0 }
 0x5cd   :  { %v1200_v18 = vpop.eup %1199 }
 0x5ce   :  { %v606_v19 = vpack.c.bf16 %v1200_v18, %v1200_v18 }
 0x5d0   :  { %1108 = vmatmul.mubr.bf16.vlgmr.msra.gmra.mrb[12].mxu1 %v606_v19 }
 0x5d1   :  { %1147 = vmatprep.mubr.msk.bf16.mxu1 %vm1353_vm0, %v1352_v0  ;;  %1132 = vmatpush3.bf16.msra.mxu1 %v1181_v13 }
 0x5d2   :  { %1133 = vmatprep.subr.bf16.mxu1 %v1352_v0 }
 0x5d5   :  { %1134 = vmatpush3.bf16.msra.mxu1 %v1182_v15 }
 0x5d6   :  { %1135 = vmatprep.subr.bf16.mxu1 %v1352_v0 }
 0x5d9   :  { %1136 = vmatpush3.bf16.msra.mxu1 %v1183_v17 }
 0x5da   :  { %1137 = vmatprep.subr.bf16.mxu1 %v1352_v0 }
 0x5dd   :  { %1138 = vmatpush3.bf16.msra.mxu1 %v1184_v20 }
 0x5de   :  { %1139 = vmatprep.subr.bf16.mxu1 %v1352_v0 }
 0x5e1   :  { %1140 = vmatpush3.bf16.msra.mxu1 %v1185_v30 }
 0x5e2   :  { %1141 = vmatprep.subr.bf16.mxu1 %v1352_v0 }
 0x5e5   :  { %1142 = vmatpush3.bf16.msra.mxu1 %v1186_v31 }
 0x5e6   :  { %1143 = vmatprep.subr.bf16.mxu1 %v1352_v0 }
 0x5e9   :  { %1144 = vmatpush3.bf16.msra.mxu1 %v1187_v32 }
 0x5ea   :  { %1145 = vmatprep.subr.bf16.mxu1 %v1352_v0 }
 0x5ed   :  { %1146 = vmatpush3.bf16.msra.mxu1 %v1188_v33 }
 0x6a3   :  { %v641_v22 = vpop.f32.mrb[12].mxu1 }
 0x6a4   :  { %v647_v24 = vadd.f32 %v641_v22, %v256_v21  ;;  %v1109_v25 = vpop.f32.mrb[13].mxu1 }
 0x6a5   :  { %v644_v26 = vpop.f32.mrb[14].mxu1 }
 0x6a6   :  { %1201 = vtanh.f32 %v647_v24  ;;  %v1110_v27 = vpop.f32.mrb[15].mxu1 }
 0x6b0   :  { %v1202_v28 = vpop.eup %1201 }
 0x6b1   :  { %v651_v29 = vpack.c.bf16 %v1202_v28, %v1202_v28 }
 0x6b3   :  { %1128 = vmatmul.mubr.bf16.vlgmr.msra.gmra.mrb[20].mxu0 %v651_v29 }
 0x786   :  { %v686_v35 = vpop.f32.mrb[20].mxu0 }
 0x787   :  { %v692_v36 = vadd.f32 %v686_v35, %v259_v34  ;;  %v1129_v37 = vpop.f32.mrb[21].mxu0 }
 0x788   :  { %v689_v39 = vpop.f32.mrb[22].mxu0 }
 0x789   :  { %1203 = vtanh.f32 %v692_v36  ;;  %v1130_v40 = vpop.f32.mrb[23].mxu0 }
 0x793   :  { %v1204_v41 = vpop.eup %1203 }
 0x794   :  { %v694_v42 = vpack.c.bf16 %v1204_v41, %v1204_v41 }
 0x796   :  { %1148 = vmatmul.mubr.bf16.vlgmr.msra.gmra.mrb[16].mxu1 %v694_v42 }
 0x869   :  { %v800_v0 = vpop.f32.mrb[16].mxu1 }
 0x86a   :  { %v801_v44 = vadd.f32 %v845_v43, %v800_v0  ;;  %v1149_v45 = vpop.f32.mrb[17].mxu1 }
 0x86b   :  { %v803_v23 = vpop.f32.mrb[18].mxu1 }
 0x86c   :  { %806 = vst [vmem:[#allocation12] sm:$0xff] %v801_v44  ;;  %v1150_v38 = vpop.f32.mrb[19].mxu1 }
 0x86d   :  { %1326 = shalt.err (!%p1323_p2)
}
 0x86e   :  { %s1327_s6 = scalar_lea.hbm %s1687_s7, 128 }
 0x86f   :  { %p1328_p3 = scmp.ne.s32.totalorder %s1687_s7, %s1327_s6  ;;  %p1331_p4 = scmp.lt.u32.totalorder %s1327_s6, %s1687_s7 }
 0x871   :  { %p1333_p5 = pnand %p1331_p4, %p1328_p3 }
 0x873   :  { %1336 = shalt.err (!%p1333_p5)
}
 0x874   :  { %816 = dma.vmem_to_hbm [thread:$0]  %s814_s14, 128, %s1687_s7, [#allocation5]  }
 0x875   :  { %1343 = dma.done.wait [#allocation5], 128  }
 0x876   :  { %1344 = vsyncadd [#allocation5], 4294967168 }
 0x877   :  { %820 = vsyncpa [#allocation4], 1 }
 0x878   :  { %821 = vsyncpa [#allocation7], 1 }
 0x879   :  { %822 = vsyncpa [#allocation10], 1 }
 0x87a   :  { %823 = vsyncpa [#allocation5], 1 }

</bundles_post_ra>
